<compile_context>
chip_gen: v6e
topology: v6e:2x2x1
jax: 0.10.0
libtpu: 0.0.40
codegen_flags: <defaults>
</compile_context>

<pallas_src>
import math

import jax
import jax.numpy as jnp
from jax.experimental import pallas as pl
from jax.experimental.pallas import tpu as pltpu

_LANES = 128  # lane width of a vreg; last block dim should be a multiple (or full)


def _ceil_div(a: int, b: int) -> int:
    return -(-a // b)


def _round_up(a: int, m: int) -> int:
    return _ceil_div(a, m) * m


def _dense_encoder_kernel(xt_ref, w1_ref, w3s_ref, ot_ref):
    # xt_ref:  (in_dim, tile_b)     activations, batch in the lane dimension
    # w1_ref:  (hidden, in_dim)     linear1.weight (PyTorch layout), VMEM-resident
    # w3s_ref: (out_dim, hidden)    linear3.weight * 1/sqrt(hidden), VMEM-resident
    # ot_ref:  (out_dim, tile_b)    y^T, lane-dense output block
    #
    # TODO(synk): for large in_dim add a K-tiled reduction grid axis ("arbitrary")
    # with an f32 VMEM accumulator instead of whole-weight residency (needed when
    # weights + activation tiles exceed ~40-48 MiB, i.e. v7x VMEM).
    ht = jnp.dot(w1_ref[...], xt_ref[...], preferred_element_type=jnp.float32)
    ht = jnp.maximum(ht, 0.0)
    # TODO(synk): for very large hidden_dim, chunk the hidden axis with a fori_loop
    # and accumulate partial (out_dim, tile_b) products instead of materializing
    # the full (hidden, tile_b) intermediate.
    yt = jnp.dot(w3s_ref[...], ht.astype(w3s_ref.dtype),
                 preferred_element_type=jnp.float32)
    ot_ref[...] = yt.astype(ot_ref.dtype)


def prepare_weights(linear1_weight: jax.Array, linear3_weight: jax.Array):
    """One-time weight prep: keep PyTorch layouts, fold 1/sqrt(hidden) into W3.

    linear1_weight: (hidden_dim, in_dim)   -> returned unchanged
    linear3_weight: (out_dim, hidden_dim)  -> scaled by 1/sqrt(hidden_dim)
    """
    hidden_dim = linear1_weight.shape[0]
    scale = 1.0 / math.sqrt(hidden_dim)
    w3_scaled = linear3_weight * jnp.asarray(scale, linear3_weight.dtype)
    return linear1_weight, w3_scaled.astype(linear3_weight.dtype)


def dense_encoder_1layer(x: jax.Array, w1: jax.Array, w3_scaled: jax.Array,
                         *, tile_b: int = 512) -> jax.Array:
    """Pallas equivalent of DenseEncoder1Layer.forward(x).

    x:         (B, in_dim)
    w1:        (hidden_dim, in_dim)   == linear1.weight (PyTorch layout)
    w3_scaled: (out_dim, hidden_dim)  == linear3.weight * (1/sqrt(hidden_dim))
    returns    (B, out_dim)
    """
    B, in_dim = x.shape
    hidden_dim, in_dim_w = w1.shape
    out_dim, hidden_w = w3_scaled.shape
    assert in_dim == in_dim_w and hidden_dim == hidden_w

    # --- batch tiling (batch is the lane dimension inside the kernel) ---------
    if B <= _LANES:
        tile_b = B  # single full-extent block (always a legal block shape)
    else:
        tile_b = min(tile_b, B)
        # v7x megacore: keep >= 2 grid steps so both TensorCores get work.
        tile_b = min(tile_b, _round_up(_ceil_div(B, 2), _LANES))
        tile_b = max(_LANES, (tile_b // _LANES) * _LANES)  # lane-aligned
    grid = (_ceil_div(B, tile_b),)  # last block may be padded; Pallas masks writes

    # --- VMEM budget / explicit scoped limit ----------------------------------
    out_dtype = x.dtype
    w_bytes = (w1.size * w1.dtype.itemsize
               + w3_scaled.size * w3_scaled.dtype.itemsize)        # Buffered(1) weights
    act_bytes = (2 * in_dim * tile_b * x.dtype.itemsize            # x^T tiles (double-buf)
                 + 2 * out_dim * tile_b * jnp.dtype(out_dtype).itemsize)  # y^T tiles
    interm_bytes = 2 * hidden_dim * tile_b * 4                     # f32 h (+ cast slack)
    budget = w_bytes + act_bytes + interm_bytes
    vmem_limit = int(min(max(2 * budget, 32 << 20), 48 << 20))     # v7x-safe ceiling
    assert budget <= vmem_limit, (
        f"VMEM budget {budget} B exceeds limit {vmem_limit} B; "
        f"shrink tile_b or add K-tiling")

    flops = 2 * B * in_dim * hidden_dim + 2 * B * hidden_dim * out_dim
    bytes_accessed = (x.size * x.dtype.itemsize
                      + w1.size * w1.dtype.itemsize
                      + w3_scaled.size * w3_scaled.dtype.itemsize
                      + B * out_dim * jnp.dtype(out_dtype).itemsize)

    xt = x.T  # layout plumbing: put batch into lanes

    yt = pl.pallas_call(
        _dense_encoder_kernel,
        out_shape=jax.ShapeDtypeStruct((out_dim, B), out_dtype),
        grid=grid,
        in_specs=[
            # activations: one batch tile per grid step
            pl.BlockSpec((in_dim, tile_b), lambda i: (0, i)),
            # weights: constant block index -> single-buffered, VMEM-resident
            pl.BlockSpec((hidden_dim, in_dim), lambda i: (0, 0),
                         pipeline_mode=pl.Buffered(1)),
            pl.BlockSpec((out_dim, hidden_dim), lambda i: (0, 0),
                         pipeline_mode=pl.Buffered(1)),
        ],
        out_specs=pl.BlockSpec((out_dim, tile_b), lambda i: (0, i)),
        compiler_params=pltpu.CompilerParams(
            dimension_semantics=("parallel",),
            vmem_limit_bytes=vmem_limit,
        ),
        cost_estimate=pl.CostEstimate(
            flops=flops, transcendentals=0, bytes_accessed=bytes_accessed),
    )(xt, w1, w3_scaled)

    return yt.T  # (B, out_dim)


if __name__ == "__main__":
    key = jax.random.PRNGKey(0)
    k1, k2, k3 = jax.random.split(key, 3)

    # Small shapes consistent with the module (von-Mises natural params -> out_dim=2).
    batch, in_dim, hidden_dim, out_dim = 16, 16, 32, 2

    x = jax.random.normal(k1, (batch, in_dim), dtype=jnp.float32)
    # PyTorch init is N(0,1) for linear1 and zeros for linear3; zero W3 would make
    # the check trivial, so random weights are used here (forward semantics are
    # init-independent). Weights are kept in PyTorch layout.
    w1 = jax.random.normal(k2, (hidden_dim, in_dim), dtype=jnp.float32)   # linear1.weight
    w3 = jax.random.normal(k3, (out_dim, hidden_dim), dtype=jnp.float32)  # linear3.weight

    w1p, w3p = prepare_weights(w1, w3)   # one-time: fold 1/sqrt(hidden) into W3
    y = dense_encoder_1layer(x, w1p, w3p)
    jax.block_until_ready(y)

    # Reference: y = relu(x @ W1.T) @ W3.T * (1/sqrt(hidden_dim))
    scale = 1.0 / math.sqrt(hidden_dim)
    y_ref = (jnp.maximum(x @ w1.T, 0.0) @ w3.T) * scale
    assert y.shape == y_ref.shape
    assert jnp.allclose(y, y_ref, atol=1e-5, rtol=1e-5), "mismatch vs reference"

    print("KERNEL_OK")
</pallas_src>

<mosaic_0001>
module attributes {stable_mosaic.version = 11 : i64} {
  func.func @_dense_encoder_kernel(%arg0: i32, %arg1: memref<16x16xf32, #tpu.memory_space<vmem>>, %arg2: memref<32x16xf32, #tpu.memory_space<vmem>>, %arg3: memref<2x32xf32, #tpu.memory_space<vmem>>, %arg4: memref<2x16xf32, #tpu.memory_space<vmem>>) attributes {dimension_semantics = [#tpu.dimension_semantics<parallel>], iteration_bounds = array<i64: 1>, scalar_prefetch = 0 : i64, scratch_operands = 0 : i64, tpu.core_type = #tpu.core_type<tc>, window_params = [{transform_indices = @transform_0, window_bounds = array<i64: 16, 16>}, {pipeline_mode = #tpu.pipeline_mode<synchronous>, transform_indices = @transform_1, window_bounds = array<i64: 32, 16>}, {pipeline_mode = #tpu.pipeline_mode<synchronous>, transform_indices = @transform_2, window_bounds = array<i64: 2, 32>}, {transform_indices = @transform_3, window_bounds = array<i64: 2, 16>}]} {
    %c0 = arith.constant 0 : index
    %c0_0 = arith.constant 0 : index
    %0 = vector.load %arg2[%c0, %c0_0] : memref<32x16xf32, #tpu.memory_space<vmem>>, vector<32x16xf32>
    %c0_1 = arith.constant 0 : index
    %c0_2 = arith.constant 0 : index
    %1 = vector.load %arg1[%c0_1, %c0_2] : memref<16x16xf32, #tpu.memory_space<vmem>>, vector<16x16xf32>
    %cst = arith.constant dense<0.000000e+00> : vector<32x16xf32>
    %2 = tpu.matmul %0, %1, %cst {dimension_numbers = #tpu.dot_dimension_numbers<[1], [0], [0], [1], [0, 0, 1, 1], [], []>} : vector<32x16xf32>, vector<16x16xf32>, vector<32x16xf32> -> vector<32x16xf32>
    %cst_3 = arith.constant 0.000000e+00 : f32
    %3 = vector.broadcast %cst_3 : f32 to vector<32x16xf32>
    %4 = arith.maximumf %2, %3 : vector<32x16xf32>
    %c0_4 = arith.constant 0 : index
    %c0_5 = arith.constant 0 : index
    %5 = vector.load %arg3[%c0_4, %c0_5] : memref<2x32xf32, #tpu.memory_space<vmem>>, vector<2x32xf32>
    %cst_6 = arith.constant dense<0.000000e+00> : vector<2x16xf32>
    %6 = tpu.matmul %5, %4, %cst_6 {dimension_numbers = #tpu.dot_dimension_numbers<[1], [0], [0], [1], [0, 0, 1, 1], [], []>} : vector<2x32xf32>, vector<32x16xf32>, vector<2x16xf32> -> vector<2x16xf32>
    %c0_7 = arith.constant 0 : index
    %c0_8 = arith.constant 0 : index
    %7 = vector.load %arg4[%c0_7, %c0_8] : memref<2x16xf32, #tpu.memory_space<vmem>>, vector<2x16xf32>
    tpu.vector_store %arg4[%c0_7, %c0_8], %6 {strides = array<i32>} : memref<2x16xf32, #tpu.memory_space<vmem>>, vector<2x16xf32>,
    return
  }
  func.func @transform_0(%arg0: i32) -> (i32, i32) {
    %c0_i32 = arith.constant 0 : i32
    %c0_i32_0 = arith.constant 0 : i32
    return %c0_i32, %arg0 : i32, i32
  }
  func.func @transform_1(%arg0: i32) -> (i32, i32) {
    %c0_i32 = arith.constant 0 : i32
    %c0_i32_0 = arith.constant 0 : i32
    %c0_i32_1 = arith.constant 0 : i32
    return %c0_i32, %c0_i32_0 : i32, i32
  }
  func.func @transform_2(%arg0: i32) -> (i32, i32) {
    %c0_i32 = arith.constant 0 : i32
    %c0_i32_0 = arith.constant 0 : i32
    %c0_i32_1 = arith.constant 0 : i32
    return %c0_i32, %c0_i32_0 : i32, i32
  }
  func.func @transform_3(%arg0: i32) -> (i32, i32) {
    %c0_i32 = arith.constant 0 : i32
    %c0_i32_0 = arith.constant 0 : i32
    return %c0_i32, %arg0 : i32, i32
  }
}

</mosaic_0001>

<bundles_post_ra>
// kernel: tpu_custom_call.1
= control target key start
LH: loop header
LB: loop body
LE: loop exit
PB: predicated region body
PF: predicated region fallthrough
CT: control target
= control target key end

     0   :  { %vm21_vm0 = vcmask 130048   ;;  %s323_s0 = inlined_call_operand.vmem [shape: f32[16,16], index: 0, kind: input, shape index: {}]   ;;  %s324_s1 = inlined_call_operand.vmem [shape: f32[32,16], index: 1, kind: input, shape index: {}]   ;;  %s325_s2 = inlined_call_operand.vmem [shape: f32[2,32], index: 2, kind: input, shape index: {}]   ;;  %s326_s3 = inlined_call_operand.hbm [shape: f32[2,16], index: 3, kind: output, shape index: {}]  }
   0x1   :  { %v20_v0 = vld [vmem:[%s323_s0 + $0x8] sm:$0xff]  ;;  %v19_v1 = vld [vmem:[%s323_s0] sm:$0xff] }
   0x2   :  { %v15_v2 = vld [vmem:[%s324_s1] sm:$0xff]  ;;  %230 = vmatprep.subr.mxu0 %v20_v0  ;;  %v16_v3 = vld [vmem:[%s324_s1 + $0x8] sm:$0xff] }
   0x3   :  { %234 = vmatprep.mubr.msk.f32.mxu0 %vm21_vm0, %v15_v2  ;;  %231 = vmatpush3.msra.mxu0 %v20_v0 }
   0x4   :  { %8 = vsyncpa [#allocation3], 0  ;;  %232 = vmatprep.subr.mxu0 %v19_v1  ;;  %v17_v4 = vld [vmem:[%s324_s1 + $0x10] sm:$0xff]  ;;  %v18_v5 = vld [vmem:[%s324_s1 + $0x18] sm:$0xff]  ;;  %v276_v6 = vmov 0.0   ;;  %vm277_vm1 = vmmov 0  }
   0x5   :  { %233 = vmatpush3.msra.mxu0 %v19_v1  ;;  %240 = vmatprep.subr.mxu1 %v276_v6  ;;  %v123_v15 = vld [vmem:[%s325_s2] sm:$0x3]  ;;  %vm124_vm2 = vcmask 261120   ;;  %s278_s24 = smov [#allocation2]   ;;  %vm198_vm3 = vcmask 123904  }
   0x6   :  { %235 = vmatmul.mubr.msk.f32.vlgmr.msra.gmra.mxu0 %vm21_vm0, %v16_v3  ;;  %248 = vmatprep.mubr.msk.f32.mxu1 %vm277_vm1, %v276_v6  ;;  %s206_s25 = sshll.u32 %s278_s24, 4  ;;  %s207_s25 = int_to_ptr.vmem [resolvable:$true] %s206_s25 }
   0x7   :  { %237 = vmatprep.mubr.msk.f32.mxu0 %vm21_vm0, %v17_v4  ;;  %s254_s26 = scalar_lea.vmem %s207_s25, 32  ;;  %p259_p1 = scmp.lt.s32.totalorder %s207_s25, %s207_s25 }
   0x8   :  { %p255_p0 = scmp.ne.s32.totalorder %s207_s25, %s254_s26  ;;  %p260_p2 = scmp.lt.s32.totalorder %s254_s26, %s254_s26 }
   0xa   :  { %238 = vmatmul.mubr.msk.f32.gmra.mxu0 %vm21_vm0, %v18_v5  ;;  %p261_p3 = por %p260_p2, %p259_p1 }
   0xc   :  { %p262_p4 = pnand %p261_p3, %p255_p0 }
  0xc6   :  { %v236_v7 = vpop.f32.mrf.mxu0 }
  0xc7   :  { %v120_v13 = vmax.f32 %v236_v7, 0.0 }
  0xc8   :  { %v100_v8 = vpop.f32.mrf.mxu0 }
  0xc9   :  { %v119_v14 = vmax.f32 %v100_v8, 0.0 }
  0xca   :  { %v239_v9 = vpop.f32.mrf.mxu0 }
  0xcb   :  { %v122_v10 = vmax.f32 %v239_v9, 0.0 }
  0xcc   :  { %v110_v11 = vpop.f32.mrf.mxu0 }
  0xcd   :  { %v121_v12 = vmax.f32 %v110_v11, 0.0  ;;  %241 = vmatpush3.msra.mxu1 %v122_v10 }
  0xce   :  { %242 = vmatprep.subr.mxu1 %v276_v6 }
  0xcf   :  { %243 = vmatpush3.msra.mxu1 %v121_v12 }
  0xd0   :  { %244 = vmatprep.subr.mxu1 %v276_v6 }
  0xd1   :  { %245 = vmatpush3.msra.mxu1 %v120_v13 }
  0xd2   :  { %246 = vmatprep.subr.mxu1 %v276_v6 }
  0xd3   :  { %247 = vmatpush3.msra.mxu1 %v119_v14 }
  0xd4   :  { %249 = vmatmul.mubr.msk.f32.vlgmr.msra.gmra.mxu1 %vm124_vm2, %v123_v15 }
 0x194   :  { %v194_v16 = vpop.f32.mrf.mxu1 }
 0x195   :  { %199 = vst.msk [vmem:[#allocation2] sm:$0x3] %vm198_vm3, %v194_v16 }
 0x196   :  { %v250_v17 = vpop.f32.mrf.mxu1 }
 0x197   :  { %265 = shalt.err (!%p262_p4)
}
 0x198   :  { %209 = dma.vmem_to_hbm [thread:$0]  %s207_s25, 32, %s326_s3, [#allocation3]  }
 0x199   :  { %274 = dma.done.wait [#allocation3], 32  }
 0x19a   :  { %275 = vsyncadd [#allocation3], 4294967264 }
 0x19b   :  { %213 = vsyncpa [#allocation3], 1 }

</bundles_post_ra>
